<compile_context>
chip_gen: v7x
topology: tpu7x:2x2x1
jax: 0.10.0
libtpu: 0.0.40
codegen_flags: <defaults>
</compile_context>

<pallas_src>
import math

import jax
import jax.numpy as jnp
from jax.experimental import pallas as pl
from jax.experimental.pallas import tpu as pltpu

P = 128                # padded lane width for every feature dimension
MAX_BATCH_TILE = 512   # rows per grid step (sweeps showed 512-1024 ~ HBM roofline)


def _round_up(n, m):
    return ((n + m - 1) // m) * m


# ----------------------------------------------------------------------------
# Kernel
# ----------------------------------------------------------------------------
def make_vae_kernel(n_enc: int, n_dec: int, f_out: str):
    """Fused VAE forward kernel.

    Ref ordering: x, eps, w_slab, b_slab, w_head, b_head,
                  xhat_out, mu_out, logvar_out
    All feature dims are pre-padded to P=128; weights are bf16, biases f32.
    """

    def kernel(x_ref, eps_ref, w_ref, b_ref, wh_ref, bh_ref,
               xhat_ref, mu_ref, logvar_ref):
        def linear(h, li):
            # bf16 MXU operands, f32 accumulation, f32 bias add (VPU).
            return (jnp.dot(h.astype(jnp.bfloat16), w_ref[li],
                            preferred_element_type=jnp.float32)
                    + b_ref[li])

        # ---- Encoder MLP -----------------------------------------------------
        h = x_ref[...]
        li = 0
        for _ in range(n_enc):
            h = jnp.maximum(linear(h, li), 0.0)
            li += 1

        # ---- Fused mu|logvar head: one 256-wide MXU push, split at lane 128 --
        head = (jnp.dot(h.astype(jnp.bfloat16), wh_ref[...],
                        preferred_element_type=jnp.float32)
                + bh_ref[...])
        mu = head[:, :P]
        logvar = head[:, P:]

        # ---- Reparameterization: z = mu + eps * exp(0.5 * logvar) ------------
        # Padded lanes of mu/logvar/eps are zero, so z's padded lanes stay zero
        # and the padded decoder matmuls remain exact.
        z = mu + eps_ref[...] * jnp.exp(0.5 * logvar)

        # ---- Decoder MLP -----------------------------------------------------
        g = z
        for _ in range(n_dec):
            g = jnp.maximum(linear(g, li), 0.0)
            li += 1

        # ---- Output layer + activation ----------------------------------------
        y = linear(g, li)
        y = jax.nn.sigmoid(y) if f_out == "sigmoid" else jnp.tanh(y)

        # Lane-dense (width-128) unmasked stores.
        xhat_ref[...] = y
        mu_ref[...] = mu
        logvar_ref[...] = logvar

    return kernel


# ----------------------------------------------------------------------------
# Parameter construction (PyTorch-style uniform init, weights stored (in, out))
# ----------------------------------------------------------------------------
def _linear_params(key, in_dim, out_dim):
    kw, kb = jax.random.split(key)
    bound = 1.0 / math.sqrt(in_dim)
    w = jax.random.uniform(kw, (in_dim, out_dim), jnp.float32, -bound, bound)
    b = jax.random.uniform(kb, (out_dim,), jnp.float32, -bound, bound)
    return w, b


def init_vae_params(key, input_dim, hidden_dims, latent_dim):
    params = {"enc": [], "dec": []}
    in_dim = input_dim
    for h_dim in hidden_dims:
        key, sub = jax.random.split(key)
        params["enc"].append(_linear_params(sub, in_dim, h_dim))
        in_dim = h_dim
    key, sub = jax.random.split(key)
    params["mu"] = _linear_params(sub, hidden_dims[-1], latent_dim)
    key, sub = jax.random.split(key)
    params["logvar"] = _linear_params(sub, hidden_dims[-1], latent_dim)
    in_dim = latent_dim
    for h_dim in reversed(hidden_dims):
        key, sub = jax.random.split(key)
        params["dec"].append(_linear_params(sub, in_dim, h_dim))
        in_dim = h_dim
    key, sub = jax.random.split(key)
    params["out"] = _linear_params(sub, hidden_dims[0], input_dim)
    return params


def pack_params(params):
    """Pack all weights/biases into padded contiguous slabs (few large DMAs,
    full 128-lane tiles). Weights -> bf16, biases -> f32."""
    layers = list(params["enc"]) + list(params["dec"]) + [params["out"]]
    L = len(layers)
    w_slab = jnp.zeros((L, P, P), jnp.float32)
    b_slab = jnp.zeros((L, 1, P), jnp.float32)
    for i, (w, b) in enumerate(layers):
        w_slab = w_slab.at[i, : w.shape[0], : w.shape[1]].set(w)
        b_slab = b_slab.at[i, 0, : b.shape[0]].set(b)
    (w_mu, b_mu), (w_lv, b_lv) = params["mu"], params["logvar"]
    w_head = jnp.zeros((P, 2 * P), jnp.float32)
    w_head = w_head.at[: w_mu.shape[0], : w_mu.shape[1]].set(w_mu)
    w_head = w_head.at[: w_lv.shape[0], P : P + w_lv.shape[1]].set(w_lv)
    b_head = jnp.zeros((1, 2 * P), jnp.float32)
    b_head = b_head.at[0, : b_mu.shape[0]].set(b_mu)
    b_head = b_head.at[0, P : P + b_lv.shape[0]].set(b_lv)
    return (w_slab.astype(jnp.bfloat16), b_slab,
            w_head.astype(jnp.bfloat16), b_head)


# ----------------------------------------------------------------------------
# Wrapper
# ----------------------------------------------------------------------------
def vae_forward(x, eps, packed, *, n_enc, n_dec, f_out):
    assert f_out in ("sigmoid", "tanh")
    w_slab, b_slab, w_head, b_head = packed
    batch, input_dim = x.shape
    latent_dim = eps.shape[1]
    L = w_slab.shape[0]

    # Batch tile: sublane-aligned, capped; pad batch to a multiple of the tile.
    tb = min(_round_up(batch, 8), MAX_BATCH_TILE)
    batch_pad = _round_up(batch, tb)

    x_pad = jnp.zeros((batch_pad, P), jnp.float32).at[:batch, :input_dim].set(x)
    eps_pad = jnp.zeros((batch_pad, P), jnp.float32).at[:batch, :latent_dim].set(eps)

    grid = (batch_pad // tb,)
    kernel = make_vae_kernel(n_enc, n_dec, f_out)

    batch_spec = pl.BlockSpec((tb, P), lambda i: (i, 0))

    def resident(shape):
        ndim = len(shape)
        return pl.BlockSpec(shape, lambda i: (0,) * ndim)

    out_shape = tuple(
        jax.ShapeDtypeStruct((batch_pad, P), jnp.float32) for _ in range(3)
    )

    fn = pl.pallas_call(
        kernel,
        out_shape=out_shape,
        grid=grid,
        in_specs=[
            batch_spec,                 # x (pipelined per batch tile)
            batch_spec,                 # eps
            resident((L, P, P)),        # packed layer weights (VMEM-resident)
            resident((L, 1, P)),        # packed layer biases
            resident((P, 2 * P)),       # fused mu|logvar head weight
            resident((1, 2 * P)),       # fused mu|logvar head bias
        ],
        out_specs=(batch_spec, batch_spec, batch_spec),
        compiler_params=pltpu.CompilerParams(
            dimension_semantics=("parallel",),   # megacore batch sharding (v7x)
        ),
    )
    xh_p, mu_p, lv_p = fn(x_pad, eps_pad, w_slab, b_slab, w_head, b_head)
    return (xh_p[:batch, :input_dim],
            mu_p[:batch, :latent_dim],
            lv_p[:batch, :latent_dim])


# ----------------------------------------------------------------------------
# References
# ----------------------------------------------------------------------------
def vae_reference_bf16(x, eps, params, f_out):
    """Mirrors kernel math: bf16 matmul operands, f32 accumulation/elementwise."""
    def lin(h, wb):
        w, b = wb
        return jnp.dot(h.astype(jnp.bfloat16), w.astype(jnp.bfloat16),
                       preferred_element_type=jnp.float32) + b
    h = x
    for wb in params["enc"]:
        h = jnp.maximum(lin(h, wb), 0.0)
    mu = lin(h, params["mu"])
    logvar = lin(h, params["logvar"])
    z = mu + eps * jnp.exp(0.5 * logvar)
    g = z
    for wb in params["dec"]:
        g = jnp.maximum(lin(g, wb), 0.0)
    y = lin(g, params["out"])
    y = jax.nn.sigmoid(y) if f_out == "sigmoid" else jnp.tanh(y)
    return y, mu, logvar


def vae_reference_f32(x, eps, params, f_out):
    """Full-f32 reference matching the original PyTorch module semantics."""
    def lin(h, wb):
        w, b = wb
        return h @ w + b
    h = x
    for wb in params["enc"]:
        h = jnp.maximum(lin(h, wb), 0.0)
    mu = lin(h, params["mu"])
    logvar = lin(h, params["logvar"])
    z = mu + eps * jnp.exp(0.5 * logvar)
    g = z
    for wb in params["dec"]:
        g = jnp.maximum(lin(g, wb), 0.0)
    y = lin(g, params["out"])
    y = jax.nn.sigmoid(y) if f_out == "sigmoid" else jnp.tanh(y)
    return y, mu, logvar


# ----------------------------------------------------------------------------
# Main
# ----------------------------------------------------------------------------
if __name__ == "__main__":
    batch = 4
    input_dim = 32
    hidden_dims = [32, 16]
    latent_dim = 8
    f_out = "sigmoid"

    key = jax.random.PRNGKey(0)
    k_params, k_x, k_eps = jax.random.split(key, 3)

    params = init_vae_params(k_params, input_dim, hidden_dims, latent_dim)
    packed = pack_params(params)

    x = jax.random.normal(k_x, (batch, input_dim), jnp.float32)
    # eps plays the role of torch.randn_like(std) in reparameterize().
    eps = jax.random.normal(k_eps, (batch, latent_dim), jnp.float32)

    x_hat, mu, logvar = vae_forward(
        x, eps, packed,
        n_enc=len(hidden_dims), n_dec=len(hidden_dims), f_out=f_out,
    )
    jax.block_until_ready((x_hat, mu, logvar))

    assert x_hat.shape == (batch, input_dim)
    assert mu.shape == (batch, latent_dim)
    assert logvar.shape == (batch, latent_dim)

    # Primary check: reference mirroring the kernel's bf16-matmul math.
    xh_r, mu_r, lv_r = vae_reference_bf16(x, eps, params, f_out)
    assert jnp.allclose(x_hat, xh_r, atol=1e-3, rtol=1e-3)
    assert jnp.allclose(mu, mu_r, atol=1e-3, rtol=1e-3)
    assert jnp.allclose(logvar, lv_r, atol=1e-3, rtol=1e-3)

    # Secondary check: full-f32 PyTorch-semantics reference (loose tolerance
    # because matmul operands are quantized to bf16 in the kernel).
    xh_f, mu_f, lv_f = vae_reference_f32(x, eps, params, f_out)
    assert jnp.allclose(x_hat, xh_f, atol=5e-2, rtol=5e-2)
    assert jnp.allclose(mu, mu_f, atol=5e-2, rtol=5e-2)
    assert jnp.allclose(logvar, lv_f, atol=5e-2, rtol=5e-2)

    print("KERNEL_OK")
</pallas_src>

<mosaic_0001>
module attributes {stable_mosaic.version = 11 : i64} {
  func.func @kernel(%arg0: i32, %arg1: memref<8x128xf32, #tpu.memory_space<vmem>>, %arg2: memref<8x128xf32, #tpu.memory_space<vmem>>, %arg3: memref<5x128x128xbf16, #tpu.memory_space<vmem>>, %arg4: memref<5x1x128xf32, #tpu.memory_space<vmem>>, %arg5: memref<128x256xbf16, #tpu.memory_space<vmem>>, %arg6: memref<1x256xf32, #tpu.memory_space<vmem>>, %arg7: memref<8x128xf32, #tpu.memory_space<vmem>>, %arg8: memref<8x128xf32, #tpu.memory_space<vmem>>, %arg9: memref<8x128xf32, #tpu.memory_space<vmem>>) attributes {dimension_semantics = [#tpu.dimension_semantics<parallel>], iteration_bounds = array<i64: 1>, scalar_prefetch = 0 : i64, scratch_operands = 0 : i64, tpu.core_type = #tpu.core_type<tc>, window_params = [{transform_indices = @transform_0, window_bounds = array<i64: 8, 128>}, {transform_indices = @transform_1, window_bounds = array<i64: 8, 128>}, {pipeline_mode = #tpu.pipeline_mode<synchronous>, transform_indices = @transform_2, window_bounds = array<i64: 5, 128, 128>}, {pipeline_mode = #tpu.pipeline_mode<synchronous>, transform_indices = @transform_3, window_bounds = array<i64: 5, 1, 128>}, {pipeline_mode = #tpu.pipeline_mode<synchronous>, transform_indices = @transform_4, window_bounds = array<i64: 128, 256>}, {pipeline_mode = #tpu.pipeline_mode<synchronous>, transform_indices = @transform_5, window_bounds = array<i64: 1, 256>}, {transform_indices = @transform_6, window_bounds = array<i64: 8, 128>}, {transform_indices = @transform_7, window_bounds = array<i64: 8, 128>}, {transform_indices = @transform_8, window_bounds = array<i64: 8, 128>}]} {
    %c0 = arith.constant 0 : index
    %c0_0 = arith.constant 0 : index
    %0 = vector.load %arg1[%c0, %c0_0] : memref<8x128xf32, #tpu.memory_space<vmem>>, vector<8x128xf32>
    %1 = arith.truncf %0 : vector<8x128xf32> to vector<8x128xbf16>
    %c0_1 = arith.constant 0 : index
    %c0_2 = arith.constant 0 : index
    %c0_3 = arith.constant 0 : index
    %2 = vector.load %arg3[%c0_1, %c0_2, %c0_3] : memref<5x128x128xbf16, #tpu.memory_space<vmem>>, vector<1x128x128xbf16>
    %3 = vector.shape_cast %2 : vector<1x128x128xbf16> to vector<128x128xbf16>
    %cst = arith.constant dense<0.000000e+00> : vector<8x128xf32>
    %4 = tpu.matmul %1, %3, %cst {dimension_numbers = #tpu.dot_dimension_numbers<[1], [0], [0], [1], [0, 0, 1, 1], [], []>} : vector<8x128xbf16>, vector<128x128xbf16>, vector<8x128xf32> -> vector<8x128xf32>
    %c0_4 = arith.constant 0 : index
    %c0_5 = arith.constant 0 : index
    %c0_6 = arith.constant 0 : index
    %5 = vector.load %arg4[%c0_4, %c0_5, %c0_6] : memref<5x1x128xf32, #tpu.memory_space<vmem>>, vector<1x1x128xf32>
    %6 = vector.shape_cast %5 : vector<1x1x128xf32> to vector<1x128xf32>
    %7 = vector.broadcast %6 : vector<1x128xf32> to vector<8x128xf32>
    %8 = arith.addf %4, %7 : vector<8x128xf32>
    %cst_7 = arith.constant 0.000000e+00 : f32
    %9 = vector.broadcast %cst_7 : f32 to vector<8x128xf32>
    %10 = arith.maximumf %8, %9 : vector<8x128xf32>
    %11 = arith.truncf %10 : vector<8x128xf32> to vector<8x128xbf16>
    %c1 = arith.constant 1 : index
    %c0_8 = arith.constant 0 : index
    %c0_9 = arith.constant 0 : index
    %12 = vector.load %arg3[%c1, %c0_8, %c0_9] : memref<5x128x128xbf16, #tpu.memory_space<vmem>>, vector<1x128x128xbf16>
    %13 = vector.shape_cast %12 : vector<1x128x128xbf16> to vector<128x128xbf16>
    %cst_10 = arith.constant dense<0.000000e+00> : vector<8x128xf32>
    %14 = tpu.matmul %11, %13, %cst_10 {dimension_numbers = #tpu.dot_dimension_numbers<[1], [0], [0], [1], [0, 0, 1, 1], [], []>} : vector<8x128xbf16>, vector<128x128xbf16>, vector<8x128xf32> -> vector<8x128xf32>
    %c1_11 = arith.constant 1 : index
    %c0_12 = arith.constant 0 : index
    %c0_13 = arith.constant 0 : index
    %15 = vector.load %arg4[%c1_11, %c0_12, %c0_13] : memref<5x1x128xf32, #tpu.memory_space<vmem>>, vector<1x1x128xf32>
    %16 = vector.shape_cast %15 : vector<1x1x128xf32> to vector<1x128xf32>
    %17 = vector.broadcast %16 : vector<1x128xf32> to vector<8x128xf32>
    %18 = arith.addf %14, %17 : vector<8x128xf32>
    %cst_14 = arith.constant 0.000000e+00 : f32
    %19 = vector.broadcast %cst_14 : f32 to vector<8x128xf32>
    %20 = arith.maximumf %18, %19 : vector<8x128xf32>
    %21 = arith.truncf %20 : vector<8x128xf32> to vector<8x128xbf16>
    %c0_15 = arith.constant 0 : index
    %c0_16 = arith.constant 0 : index
    %22 = vector.load %arg5[%c0_15, %c0_16] : memref<128x256xbf16, #tpu.memory_space<vmem>>, vector<128x256xbf16>
    %cst_17 = arith.constant dense<0.000000e+00> : vector<8x256xf32>
    %23 = tpu.matmul %21, %22, %cst_17 {dimension_numbers = #tpu.dot_dimension_numbers<[1], [0], [0], [1], [0, 0, 1, 1], [], []>} : vector<8x128xbf16>, vector<128x256xbf16>, vector<8x256xf32> -> vector<8x256xf32>
    %c0_18 = arith.constant 0 : index
    %c0_19 = arith.constant 0 : index
    %24 = vector.load %arg6[%c0_18, %c0_19] : memref<1x256xf32, #tpu.memory_space<vmem>>, vector<1x256xf32>
    %25 = vector.broadcast %24 : vector<1x256xf32> to vector<8x256xf32>
    %26 = arith.addf %23, %25 : vector<8x256xf32>
    %27 = vector.extract_strided_slice %26 {offsets = [0, 0], sizes = [8, 128], strides = [1, 1]} : vector<8x256xf32> to vector<8x128xf32>
    %28 = vector.extract_strided_slice %26 {offsets = [0, 128], sizes = [8, 128], strides = [1, 1]} : vector<8x256xf32> to vector<8x128xf32>
    %c0_20 = arith.constant 0 : index
    %c0_21 = arith.constant 0 : index
    %29 = vector.load %arg2[%c0_20, %c0_21] : memref<8x128xf32, #tpu.memory_space<vmem>>, vector<8x128xf32>
    %cst_22 = arith.constant 5.000000e-01 : f32
    %30 = vector.broadcast %cst_22 : f32 to vector<8x128xf32>
    %31 = arith.mulf %30, %28 : vector<8x128xf32>
    %32 = math.exp %31 : vector<8x128xf32>
    %33 = arith.mulf %29, %32 : vector<8x128xf32>
    %34 = arith.addf %27, %33 : vector<8x128xf32>
    %35 = arith.truncf %34 : vector<8x128xf32> to vector<8x128xbf16>
    %c2 = arith.constant 2 : index
    %c0_23 = arith.constant 0 : index
    %c0_24 = arith.constant 0 : index
    %36 = vector.load %arg3[%c2, %c0_23, %c0_24] : memref<5x128x128xbf16, #tpu.memory_space<vmem>>, vector<1x128x128xbf16>
    %37 = vector.shape_cast %36 : vector<1x128x128xbf16> to vector<128x128xbf16>
    %cst_25 = arith.constant dense<0.000000e+00> : vector<8x128xf32>
    %38 = tpu.matmul %35, %37, %cst_25 {dimension_numbers = #tpu.dot_dimension_numbers<[1], [0], [0], [1], [0, 0, 1, 1], [], []>} : vector<8x128xbf16>, vector<128x128xbf16>, vector<8x128xf32> -> vector<8x128xf32>
    %c2_26 = arith.constant 2 : index
    %c0_27 = arith.constant 0 : index
    %c0_28 = arith.constant 0 : index
    %39 = vector.load %arg4[%c2_26, %c0_27, %c0_28] : memref<5x1x128xf32, #tpu.memory_space<vmem>>, vector<1x1x128xf32>
    %40 = vector.shape_cast %39 : vector<1x1x128xf32> to vector<1x128xf32>
    %41 = vector.broadcast %40 : vector<1x128xf32> to vector<8x128xf32>
    %42 = arith.addf %38, %41 : vector<8x128xf32>
    %cst_29 = arith.constant 0.000000e+00 : f32
    %43 = vector.broadcast %cst_29 : f32 to vector<8x128xf32>
    %44 = arith.maximumf %42, %43 : vector<8x128xf32>
    %45 = arith.truncf %44 : vector<8x128xf32> to vector<8x128xbf16>
    %c3 = arith.constant 3 : index
    %c0_30 = arith.constant 0 : index
    %c0_31 = arith.constant 0 : index
    %46 = vector.load %arg3[%c3, %c0_30, %c0_31] : memref<5x128x128xbf16, #tpu.memory_space<vmem>>, vector<1x128x128xbf16>
    %47 = vector.shape_cast %46 : vector<1x128x128xbf16> to vector<128x128xbf16>
    %cst_32 = arith.constant dense<0.000000e+00> : vector<8x128xf32>
    %48 = tpu.matmul %45, %47, %cst_32 {dimension_numbers = #tpu.dot_dimension_numbers<[1], [0], [0], [1], [0, 0, 1, 1], [], []>} : vector<8x128xbf16>, vector<128x128xbf16>, vector<8x128xf32> -> vector<8x128xf32>
    %c3_33 = arith.constant 3 : index
    %c0_34 = arith.constant 0 : index
    %c0_35 = arith.constant 0 : index
    %49 = vector.load %arg4[%c3_33, %c0_34, %c0_35] : memref<5x1x128xf32, #tpu.memory_space<vmem>>, vector<1x1x128xf32>
    %50 = vector.shape_cast %49 : vector<1x1x128xf32> to vector<1x128xf32>
    %51 = vector.broadcast %50 : vector<1x128xf32> to vector<8x128xf32>
    %52 = arith.addf %48, %51 : vector<8x128xf32>
    %cst_36 = arith.constant 0.000000e+00 : f32
    %53 = vector.broadcast %cst_36 : f32 to vector<8x128xf32>
    %54 = arith.maximumf %52, %53 : vector<8x128xf32>
    %55 = arith.truncf %54 : vector<8x128xf32> to vector<8x128xbf16>
    %c4 = arith.constant 4 : index
    %c0_37 = arith.constant 0 : index
    %c0_38 = arith.constant 0 : index
    %56 = vector.load %arg3[%c4, %c0_37, %c0_38] : memref<5x128x128xbf16, #tpu.memory_space<vmem>>, vector<1x128x128xbf16>
    %57 = vector.shape_cast %56 : vector<1x128x128xbf16> to vector<128x128xbf16>
    %cst_39 = arith.constant dense<0.000000e+00> : vector<8x128xf32>
    %58 = tpu.matmul %55, %57, %cst_39 {dimension_numbers = #tpu.dot_dimension_numbers<[1], [0], [0], [1], [0, 0, 1, 1], [], []>} : vector<8x128xbf16>, vector<128x128xbf16>, vector<8x128xf32> -> vector<8x128xf32>
    %c4_40 = arith.constant 4 : index
    %c0_41 = arith.constant 0 : index
    %c0_42 = arith.constant 0 : index
    %59 = vector.load %arg4[%c4_40, %c0_41, %c0_42] : memref<5x1x128xf32, #tpu.memory_space<vmem>>, vector<1x1x128xf32>
    %60 = vector.shape_cast %59 : vector<1x1x128xf32> to vector<1x128xf32>
    %61 = vector.broadcast %60 : vector<1x128xf32> to vector<8x128xf32>
    %62 = arith.addf %58, %61 : vector<8x128xf32>
    %63 = arith.negf %62 : vector<8x128xf32>
    %64 = math.exp %63 : vector<8x128xf32>
    %cst_43 = arith.constant 1.000000e+00 : f32
    %65 = vector.broadcast %cst_43 : f32 to vector<8x128xf32>
    %66 = arith.addf %65, %64 : vector<8x128xf32>
    %67 = arith.divf %65, %66 : vector<8x128xf32>
    %c0_44 = arith.constant 0 : index
    %c0_45 = arith.constant 0 : index
    %68 = vector.load %arg7[%c0_44, %c0_45] : memref<8x128xf32, #tpu.memory_space<vmem>>, vector<8x128xf32>
    tpu.vector_store %arg7[%c0_44, %c0_45], %67 {strides = array<i32>} : memref<8x128xf32, #tpu.memory_space<vmem>>, vector<8x128xf32>,
    %c0_46 = arith.constant 0 : index
    %c0_47 = arith.constant 0 : index
    %69 = vector.load %arg8[%c0_46, %c0_47] : memref<8x128xf32, #tpu.memory_space<vmem>>, vector<8x128xf32>
    tpu.vector_store %arg8[%c0_46, %c0_47], %27 {strides = array<i32>} : memref<8x128xf32, #tpu.memory_space<vmem>>, vector<8x128xf32>,
    %c0_48 = arith.constant 0 : index
    %c0_49 = arith.constant 0 : index
    %70 = vector.load %arg9[%c0_48, %c0_49] : memref<8x128xf32, #tpu.memory_space<vmem>>, vector<8x128xf32>
    tpu.vector_store %arg9[%c0_48, %c0_49], %28 {strides = array<i32>} : memref<8x128xf32, #tpu.memory_space<vmem>>, vector<8x128xf32>,
    return
  }
  func.func @transform_0(%arg0: i32) -> (i32, i32) {
    %c0_i32 = arith.constant 0 : i32
    %c0_i32_0 = arith.constant 0 : i32
    return %arg0, %c0_i32 : i32, i32
  }
  func.func @transform_1(%arg0: i32) -> (i32, i32) {
    %c0_i32 = arith.constant 0 : i32
    %c0_i32_0 = arith.constant 0 : i32
    return %arg0, %c0_i32 : i32, i32
  }
  func.func @transform_2(%arg0: i32) -> (i32, i32, i32) {
    %c0_i32 = arith.constant 0 : i32
    %c0_i32_0 = arith.constant 0 : i32
    %c0_i32_1 = arith.constant 0 : i32
    %c0_i32_2 = arith.constant 0 : i32
    return %c0_i32, %c0_i32_0, %c0_i32_1 : i32, i32, i32
  }
  func.func @transform_3(%arg0: i32) -> (i32, i32, i32) {
    %c0_i32 = arith.constant 0 : i32
    %c0_i32_0 = arith.constant 0 : i32
    %c0_i32_1 = arith.constant 0 : i32
    %c0_i32_2 = arith.constant 0 : i32
    return %c0_i32, %c0_i32_0, %c0_i32_1 : i32, i32, i32
  }
  func.func @transform_4(%arg0: i32) -> (i32, i32) {
    %c0_i32 = arith.constant 0 : i32
    %c0_i32_0 = arith.constant 0 : i32
    %c0_i32_1 = arith.constant 0 : i32
    return %c0_i32, %c0_i32_0 : i32, i32
  }
  func.func @transform_5(%arg0: i32) -> (i32, i32) {
    %c0_i32 = arith.constant 0 : i32
    %c0_i32_0 = arith.constant 0 : i32
    %c0_i32_1 = arith.constant 0 : i32
    return %c0_i32, %c0_i32_0 : i32, i32
  }
  func.func @transform_6(%arg0: i32) -> (i32, i32) {
    %c0_i32 = arith.constant 0 : i32
    %c0_i32_0 = arith.constant 0 : i32
    return %arg0, %c0_i32 : i32, i32
  }
  func.func @transform_7(%arg0: i32) -> (i32, i32) {
    %c0_i32 = arith.constant 0 : i32
    %c0_i32_0 = arith.constant 0 : i32
    return %arg0, %c0_i32 : i32, i32
  }
  func.func @transform_8(%arg0: i32) -> (i32, i32) {
    %c0_i32 = arith.constant 0 : i32
    %c0_i32_0 = arith.constant 0 : i32
    return %arg0, %c0_i32 : i32, i32
  }
}

</mosaic_0001>

<bundles_post_ra>
// kernel: tpu_custom_call.1
= control target key start
LH: loop header
LB: loop body
LE: loop exit
PB: predicated region body
PF: predicated region fallthrough
CT: control target
= control target key end

     0   :  { %14 = vsyncpa [#allocation3], 0  ;;  %s1532_s0 = inlined_call_operand.hbm [shape: f32[8,128], index: 0, kind: input, shape index: {}]   ;;  %s1533_s1 = inlined_call_operand.hbm [shape: f32[8,128], index: 1, kind: input, shape index: {}]   ;;  %s1534_s2 = inlined_call_operand.hbm [shape: bf16[5,128,128], index: 2, kind: input, shape index: {}]   ;;  %s1535_s3 = inlined_call_operand.vmem [shape: f32[5,1,128], index: 3, kind: input, shape index: {}]   ;;  %s1536_s4 = inlined_call_operand.hbm [shape: bf16[128,256], index: 4, kind: input, shape index: {}]   ;;  %s1537_s5 = inlined_call_operand.vmem [shape: f32[1,256], index: 5, kind: input, shape index: {}]   ;;  %s1538_s6 = inlined_call_operand.hbm [shape: f32[8,128], index: 6, kind: output, shape index: {0}]   ;;  %s1539_s7 = inlined_call_operand.hbm [shape: f32[8,128], index: 7, kind: output, shape index: {1}]   ;;  %s1540_s8 = inlined_call_operand.hbm [shape: f32[8,128], index: 8, kind: output, shape index: {2}]  }
   0x1   :  { %15 = vsyncpa [#allocation6], 0 }
   0x2   :  { %16 = vsyncpa [#allocation9], 0 }
   0x3   :  { %17 = vsyncpa [#allocation4], 0 }
   0x4   :  { %18 = vsyncpa [#allocation12], 0  ;;  %s1321_s27 = smov [#allocation5]   ;;  %s1322_s29 = smov [#allocation2]  }
   0x5   :  { %s35_s28 = sshll.u32 %s1321_s27, 4  ;;  %s25_s30 = sshll.u32 %s1322_s29, 4  ;;  %s36_s28 = int_to_ptr.vmem [resolvable:$true] %s35_s28  ;;  %s26_s30 = int_to_ptr.vmem [resolvable:$true] %s25_s30 }
   0x6   :  { %s1157_s11 = scalar_lea.hbm %s1533_s1, 128 }
   0x7   :  { %p1158_p0 = scmp.ne.s32.totalorder %s1533_s1, %s1157_s11  ;;  %p1161_p1 = scmp.lt.u32.totalorder %s1157_s11, %s1533_s1 }
   0x9   :  { %p1163_p2 = pnand %p1161_p1, %p1158_p0 }
   0xb   :  { %1166 = shalt.err (!%p1163_p2)
}
   0xc   :  { %s1167_s16 = scalar_lea.vmem %s36_s28, 128  ;;  %p1172_p4 = scmp.lt.s32.totalorder %s36_s28, %s36_s28 }
   0xd   :  { %p1168_p3 = scmp.ne.s32.totalorder %s36_s28, %s1167_s16  ;;  %p1173_p5 = scmp.lt.s32.totalorder %s1167_s16, %s1167_s16 }
   0xf   :  { %p1174_p6 = por %p1173_p5, %p1172_p4 }
  0x11   :  { %p1175_p7 = pnand %p1174_p6, %p1168_p3 }
  0x13   :  { %1178 = shalt.err (!%p1175_p7)
}
  0x14   :  { %38 = dma.hbm_to_vmem [thread:$0]  %s1533_s1, 128, %s36_s28, [#allocation6]  }
  0x15   :  { %s1179_s21 = scalar_lea.hbm %s1532_s0, 128 }
  0x16   :  { %p1180_p8 = scmp.ne.s32.totalorder %s1532_s0, %s1179_s21  ;;  %p1183_p9 = scmp.lt.u32.totalorder %s1179_s21, %s1532_s0 }
  0x18   :  { %p1185_p10 = pnand %p1183_p9, %p1180_p8 }
  0x1a   :  { %1188 = shalt.err (!%p1185_p10)
}
  0x1b   :  { %s1189_s26 = scalar_lea.vmem %s26_s30, 128  ;;  %p1194_p12 = scmp.lt.s32.totalorder %s26_s30, %s26_s30 }
  0x1c   :  { %p1190_p11 = scmp.ne.s32.totalorder %s26_s30, %s1189_s26  ;;  %p1195_p13 = scmp.lt.s32.totalorder %s1189_s26, %s1189_s26 }
  0x1e   :  { %p1196_p0 = por %p1195_p13, %p1194_p12 }
  0x20   :  { %p1197_p1 = pnand %p1196_p0, %p1190_p11 }
  0x22   :  { %1200 = shalt.err (!%p1197_p1)
}
  0x23   :  { %28 = dma.hbm_to_vmem [thread:$0]  %s1532_s0, 128, %s26_s30, [#allocation3]  }
  0x24   :  { %s1323_s28 = smov [#allocation7]   ;;  %s1201_s11 = scalar_lea.hbm %s1534_s2, 5120 }
  0x25   :  { %s44_s29 = sshll.u32 %s1323_s28, 4  ;;  %p1202_p2 = scmp.ne.s32.totalorder %s1534_s2, %s1201_s11  ;;  %s45_s29 = int_to_ptr.vmem [resolvable:$true] %s44_s29 }
  0x26   :  { %p1205_p3 = scmp.lt.u32.totalorder %s1201_s11, %s1534_s2 }
  0x28   :  { %p1207_p4 = pnand %p1205_p3, %p1202_p2 }
  0x2a   :  { %1210 = shalt.err (!%p1207_p4)
}
  0x2b   :  { %s1211_s16 = scalar_lea.vmem %s45_s29, 5120  ;;  %p1216_p6 = scmp.lt.s32.totalorder %s45_s29, %s45_s29 }
  0x2c   :  { %p1212_p5 = scmp.ne.s32.totalorder %s45_s29, %s1211_s16  ;;  %p1217_p7 = scmp.lt.s32.totalorder %s1211_s16, %s1211_s16 }
  0x2e   :  { %p1218_p8 = por %p1217_p7, %p1216_p6 }
  0x30   :  { %p1219_p9 = pnand %p1218_p8, %p1212_p5 }
  0x32   :  { %1222 = shalt.err (!%p1219_p9)
}
  0x33   :  { %s1324_s0 = smov 64   ;;  %s1325_s30 = smov 4  }
  0x34   :  { %50 = dma.hbm_to_vmem [thread:$0]  %s1534_s2, 5120, %s45_s29, [#allocation6], %s1324_s0, %s1324_s0, %s1325_s30  }
  0x35   :  { %s1326_s19 = smov [#allocation8]   ;;  %s1223_s23 = scalar_lea.hbm %s1536_s4, 2048 }
  0x36   :  { %s58_s20 = sshll.u32 %s1326_s19, 4  ;;  %p1224_p10 = scmp.ne.s32.totalorder %s1536_s4, %s1223_s23  ;;  %s59_s20 = int_to_ptr.vmem [resolvable:$true] %s58_s20 }
  0x37   :  { %p1227_p11 = scmp.lt.u32.totalorder %s1223_s23, %s1536_s4 }
  0x39   :  { %p1229_p12 = pnand %p1227_p11, %p1224_p10 }
  0x3b   :  { %1232 = shalt.err (!%p1229_p12)
}
  0x3c   :  { %s1233_s27 = scalar_lea.vmem %s59_s20, 2048  ;;  %p1238_p0 = scmp.lt.s32.totalorder %s59_s20, %s59_s20 }
  0x3d   :  { %p1234_p13 = scmp.ne.s32.totalorder %s59_s20, %s1233_s27  ;;  %p1239_p1 = scmp.lt.s32.totalorder %s1233_s27, %s1233_s27 }
  0x3f   :  { %p1240_p2 = por %p1239_p1, %p1238_p0 }
  0x41   :  { %p1241_p3 = pnand %p1240_p2, %p1234_p13 }
  0x43   :  { %1244 = shalt.err (!%p1241_p3)
}
  0x44   :  { %s1327_s2 = smov 128   ;;  %s1328_s28 = smov 8  }
  0x45   :  { %64 = dma.hbm_to_vmem [thread:$0]  %s1536_s4, 2048, %s59_s20, [#allocation9], %s1327_s2, %s1327_s2, %s1328_s28  }
  0x46   :  { %1311 = dma.done.wait [#allocation3], 128  }
  0x47   :  { %1312 = vsyncadd [#allocation3], 4294967168 }
  0x48   :  { %1313 = dma.done.wait [#allocation6], 5248  }
  0x49   :  { %1314 = vsyncadd [#allocation6], 4294962048 }
  0x4a   :  { %1315 = dma.done.wait [#allocation9], 2048  }
  0x4b   :  { %1316 = vsyncadd [#allocation9], 4294965248  ;;  %v1329_v0 = vmov 0.0   ;;  %vm1330_vm0 = vmmov 0   ;;  %v1087_v1 = vld [vmem:[#allocation7] sm:$0xff]   ;;  %v1088_v2 = vld [vmem:[#allocation7 + $0x8] sm:$0xff]  }
  0x4c   :  { %973 = vmatprep.subr.bf16.mxu0 %v1329_v0  ;;  %989 = vmatprep.mubr.msk.bf16.mxu0 %vm1330_vm0, %v1329_v0  ;;  %v1089_v3 = vld [vmem:[#allocation7 + $0x10] sm:$0xff]   ;;  %v1095_v4 = vld [vmem:[#allocation7 + $0x40] sm:$0xff]   ;;  %v1090_v5 = vld [vmem:[#allocation7 + $0x18] sm:$0xff]   ;;  %v1331_v43 = vmov 0   ;;  %s1332_s30 = smov [#allocation11]  }
  0x4d   :  { %993 = vmatprep.subr.bf16.mxu1 %v1329_v0  ;;  %1009 = vmatprep.mubr.msk.bf16.mxu1 %vm1330_vm0, %v1329_v0  ;;  %v1096_v6 = vld [vmem:[#allocation7 + $0x48] sm:$0xff]   ;;  %v1091_v7 = vld [vmem:[#allocation7 + $0x20] sm:$0xff]   ;;  %v1097_v8 = vld [vmem:[#allocation7 + $0x50] sm:$0xff]   ;;  %s834_s17 = sshll.u32 %s1332_s30, 4  ;;  %s835_s17 = int_to_ptr.vmem [resolvable:$true] %s834_s17 }
  0x4e   :  { %974 = vmatpush3.bf16.msra.mxu0 %v1087_v1  ;;  %994 = vmatpush3.bf16.msra.mxu1 %v1095_v4  ;;  %v1092_v9 = vld [vmem:[#allocation7 + $0x28] sm:$0xff]   ;;  %v1098_v10 = vld [vmem:[#allocation7 + $0x58] sm:$0xff]   ;;  %v1093_v11 = vld [vmem:[#allocation7 + $0x30] sm:$0xff]   ;;  %s1245_s18 = scalar_lea.vmem %s835_s17, 128  ;;  %p1250_p5 = scmp.lt.s32.totalorder %s835_s17, %s835_s17 }
  0x4f   :  { %975 = vmatprep.subr.bf16.mxu0 %v1329_v0  ;;  %995 = vmatprep.subr.bf16.mxu1 %v1329_v0  ;;  %v1099_v12 = vld [vmem:[#allocation7 + $0x60] sm:$0xff]   ;;  %v1094_v13 = vld [vmem:[#allocation7 + $0x38] sm:$0xff]   ;;  %v80_v14 = vld [vmem:[#allocation2] sm:$0xff]  ;;  %p1246_p4 = scmp.ne.s32.totalorder %s835_s17, %s1245_s18  ;;  %p1251_p6 = scmp.lt.s32.totalorder %s1245_s18, %s1245_s18 }
  0x50   :  { %v1100_v15 = vld [vmem:[#allocation7 + $0x68] sm:$0xff]   ;;  %v81_v16 = vpack.c.bf16 %v80_v14, %v80_v14  ;;  %v1101_v17 = vld [vmem:[#allocation7 + $0x70] sm:$0xff]   ;;  %v1102_v18 = vld [vmem:[#allocation7 + $0x78] sm:$0xff]  }
  0x51   :  { %v1103_v19 = vld [vmem:[#allocation8] ss:$8 sps:$4 sm:$0xff]   ;;  %v1105_v20 = vld [vmem:[#allocation8 + $0x4] ss:$8 sps:$4 sm:$0xff]   ;;  %v1108_v21 = vld [vmem:[#allocation8 + $0x14] ss:$8 sps:$4 sm:$0xff]   ;;  %p1252_p7 = por %p1251_p6, %p1250_p5 }
  0x52   :  { %976 = vmatpush3.bf16.msra.mxu0 %v1088_v2  ;;  %996 = vmatpush3.bf16.msra.mxu1 %v1096_v6  ;;  %v1106_v22 = vld [vmem:[#allocation8 + $0x10] ss:$8 sps:$4 sm:$0xff]   ;;  %v1111_v23 = vld [vmem:[#allocation8 + $0x24] ss:$8 sps:$4 sm:$0xff]   ;;  %v1109_v24 = vld [vmem:[#allocation8 + $0x20] ss:$8 sps:$4 sm:$0xff]  }
  0x53   :  { %977 = vmatprep.subr.bf16.mxu0 %v1329_v0  ;;  %997 = vmatprep.subr.bf16.mxu1 %v1329_v0  ;;  %v1114_v25 = vld [vmem:[#allocation8 + $0x34] ss:$8 sps:$4 sm:$0xff]   ;;  %v1112_v26 = vld [vmem:[#allocation8 + $0x30] ss:$8 sps:$4 sm:$0xff]   ;;  %v1117_v27 = vld [vmem:[#allocation8 + $0x44] ss:$8 sps:$4 sm:$0xff]   ;;  %p1253_p8 = pnand %p1252_p7, %p1246_p4 }
  0x54   :  { %v1115_v28 = vld [vmem:[#allocation8 + $0x40] ss:$8 sps:$4 sm:$0xff]   ;;  %v1120_v29 = vld [vmem:[#allocation8 + $0x54] ss:$8 sps:$4 sm:$0xff]   ;;  %v1118_v30 = vld [vmem:[#allocation8 + $0x50] ss:$8 sps:$4 sm:$0xff]  }
  0x55   :  { %v1123_v31 = vld [vmem:[#allocation8 + $0x64] ss:$8 sps:$4 sm:$0xff]   ;;  %v1121_v32 = vld [vmem:[#allocation8 + $0x60] ss:$8 sps:$4 sm:$0xff]   ;;  %v862_v33 = vld [vmem:[%s1535_s3] ss:$0 sm:$0xff] }
  0x56   :  { %978 = vmatpush3.bf16.msra.mxu0 %v1089_v3  ;;  %998 = vmatpush3.bf16.msra.mxu1 %v1097_v8  ;;  %v1126_v41 = vld [vmem:[#allocation8 + $0x74] ss:$8 sps:$4 sm:$0xff]   ;;  %v1124_v42 = vld [vmem:[#allocation8 + $0x70] ss:$8 sps:$4 sm:$0xff]   ;;  %v1127_v44 = vld [vmem:[#allocation7 + $0x80] sm:$0xff]   ;;  %v328_v3 = vlaneseq }
  0x57   :  { %979 = vmatprep.subr.bf16.mxu0 %v1329_v0  ;;  %999 = vmatprep.subr.bf16.mxu1 %v1329_v0  ;;  %v1128_v45 = vld [vmem:[#allocation7 + $0x88] sm:$0xff]   ;;  %v872_v46 = vld [vmem:[%s1535_s3 + $0x1] ss:$0 sm:$0xff]  ;;  %v1130_v55 = vld [vmem:[#allocation7 + $0x98] sm:$0xff]  }
  0x58   :  { %v1129_v54 = vld [vmem:[#allocation7 + $0x90] sm:$0xff]   ;;  %v1131_v56 = vld [vmem:[#allocation7 + $0xa0] sm:$0xff]   ;;  %v1132_v57 = vld [vmem:[#allocation7 + $0xa8] sm:$0xff]   ;;  %v329_v4 = vshrl.u32 %v328_v3, 7 }
  0x59   :  { %v1133_v58 = vld [vmem:[#allocation7 + $0xb0] sm:$0xff]   ;;  %v1134_v59 = vld [vmem:[#allocation7 + $0xb8] sm:$0xff]   ;;  %v1135_v60 = vld [vmem:[#allocation7 + $0xc0] sm:$0xff]  }
  0x5a   :  { %980 = vmatpush3.bf16.msra.mxu0 %v1090_v5  ;;  %1000 = vmatpush3.bf16.msra.mxu1 %v1098_v10  ;;  %v1136_v61 = vld [vmem:[#allocation7 + $0xc8] sm:$0xff]   ;;  %v1137_v62 = vld [vmem:[#allocation7 + $0xd0] sm:$0xff]   ;;  %v1138_v63 = vld [vmem:[#allocation7 + $0xd8] sm:$0xff]   ;;  %v330_v5 = vsub.s32 0, %v329_v4 }
  0x5b   :  { %981 = vmatprep.subr.bf16.mxu0 %v1329_v0  ;;  %1001 = vmatprep.subr.bf16.mxu1 %v1329_v0  ;;  %v1139_v1 = vld [vmem:[#allocation7 + $0xe0] sm:$0xff]   ;;  %v1140_v2 = vld [vmem:[#allocation7 + $0xe8] sm:$0xff]   ;;  %v326_v6 = vld [vmem:[%s1537_s5] sm:$0x3] }
  0x5c   :  { %v331_v8 = vrot.slane %v326_v6, %v330_v5 }
  0x5e   :  { %982 = vmatpush3.bf16.msra.mxu0 %v1091_v7  ;;  %1002 = vmatpush3.bf16.msra.mxu1 %v1099_v12  ;;  %v334_v7 = vsub.s32 1, %v329_v4 }
  0x5f   :  { %983 = vmatprep.subr.bf16.mxu0 %v1329_v0  ;;  %1003 = vmatprep.subr.bf16.mxu1 %v1329_v0 }
  0x62   :  { %984 = vmatpush3.bf16.msra.mxu0 %v1092_v9  ;;  %1004 = vmatpush3.bf16.msra.mxu1 %v1100_v15  ;;  %v335_v9 = vrot.slane %v326_v6, %v334_v7 }
  0x63   :  { %985 = vmatprep.subr.bf16.mxu0 %v1329_v0  ;;  %1005 = vmatprep.subr.bf16.mxu1 %v1329_v0 }
  0x66   :  { %986 = vmatpush3.bf16.msra.mxu0 %v1093_v11  ;;  %1006 = vmatpush3.bf16.msra.mxu1 %v1101_v17 }
  0x67   :  { %987 = vmatprep.subr.bf16.mxu0 %v1329_v0  ;;  %1007 = vmatprep.subr.bf16.mxu1 %v1329_v0 }
  0x6a   :  { %988 = vmatpush3.bf16.msra.mxu0 %v1094_v13  ;;  %1008 = vmatpush3.bf16.msra.mxu1 %v1102_v18  ;;  %v459_v18 = vld [vmem:[#allocation5] sm:$0xff] }
  0x6b   :  { %1013 = vmatprep.subr.bf16.mxu1 %v1329_v0  ;;  %418 = vmatprep.subr.bf16.mxu0 %v1105_v20 }
  0x6d   :  { %990 = vmatmul.mubr.bf16.vlgmr.msra.gmra.mrb[0].mxu0 %v81_v16 }
  0x6e   :  { %419 = vmatpush1.bf16.msra.mxu0 %v1103_v19  ;;  %450 = vmatprep.mubr.bf16.mxu0 %v1331_v43 }
  0x6f   :  { %420 = vmatprep.subr.bf16.mxu0 %v1108_v21 }
  0x72   :  { %421 = vmatpush1.bf16.msra.mxu0 %v1106_v22 }
  0x73   :  { %422 = vmatprep.subr.bf16.mxu0 %v1111_v23  ;;  %v1141_v23 = vld [vmem:[#allocation7 + $0xf0] sm:$0xff]  }
  0x76   :  { %423 = vmatpush1.bf16.msra.mxu0 %v1109_v24  ;;  %v1142_v24 = vld [vmem:[#allocation7 + $0xf8] sm:$0xff]  }
  0x77   :  { %424 = vmatprep.subr.bf16.mxu0 %v1114_v25  ;;  %v1143_v25 = vld [vmem:[#allocation7 + $0x100] sm:$0xff]  }
  0x7a   :  { %425 = vmatpush1.bf16.msra.mxu0 %v1112_v26  ;;  %v1144_v26 = vld [vmem:[#allocation7 + $0x108] sm:$0xff]  }
  0x7b   :  { %426 = vmatprep.subr.bf16.mxu0 %v1117_v27  ;;  %v1145_v27 = vld [vmem:[#allocation7 + $0x110] sm:$0xff]  }
  0x7e   :  { %427 = vmatpush1.bf16.msra.mxu0 %v1115_v28  ;;  %v1146_v28 = vld [vmem:[#allocation7 + $0x118] sm:$0xff]  }
  0x7f   :  { %428 = vmatprep.subr.bf16.mxu0 %v1120_v29  ;;  %v1147_v29 = vld [vmem:[#allocation7 + $0x120] sm:$0xff]  }
  0x82   :  { %429 = vmatpush1.bf16.msra.mxu0 %v1118_v30  ;;  %v1148_v30 = vld [vmem:[#allocation7 + $0x128] sm:$0xff]  }
  0x83   :  { %430 = vmatprep.subr.bf16.mxu0 %v1123_v31  ;;  %v898_v31 = vld [vmem:[%s1535_s3 + $0x2] ss:$0 sm:$0xff] }
  0x86   :  { %431 = vmatpush1.bf16.msra.mxu0 %v1121_v32 }
  0x87   :  { %432 = vmatprep.subr.bf16.mxu0 %v1126_v41  ;;  %v908_v41 = vld [vmem:[%s1535_s3 + $0x3] ss:$0 sm:$0xff] }
  0x8a   :  { %433 = vmatpush1.bf16.msra.mxu0 %v1124_v42 }
  0x8b   :  { %1033 = vmatprep.subr.bf16.mxu0 %v1329_v0 }
 0x140   :  { %v187_v34 = vpop.f32.mrb[0].mxu0 }
 0x141   :  { %v188_v35 = vadd.f32 %v862_v33, %v187_v34  ;;  %v991_v36 = vpop.f32.mrb[1].mxu0 }
 0x142   :  { %v190_v37 = vpop.f32.mrb[2].mxu0 }
 0x143   :  { %v193_v38 = vmax.f32 %v188_v35, 0.0  ;;  %v992_v39 = vpop.f32.mrb[3].mxu0 }
 0x144   :  { %v1149_v39 = vld [vmem:[#allocation7 + $0x130] sm:$0xff]  }
 0x145   :  { %v194_v40 = vpack.c.bf16 %v193_v38, %v193_v38 }
 0x147   :  { %1010 = vmatmul.mubr.bf16.vlgmr.msra.gmra.mrb[0].mxu1 %v194_v40  ;;  %v1150_v40 = vld [vmem:[#allocation7 + $0x138] sm:$0xff]  }
 0x148   :  { %1029 = vmatprep.mubr.msk.bf16.mxu1 %vm1330_vm0, %v1329_v0  ;;  %1014 = vmatpush3.bf16.msra.mxu1 %v1127_v44 }
 0x149   :  { %1015 = vmatprep.subr.bf16.mxu1 %v1329_v0 }
 0x14c   :  { %1016 = vmatpush3.bf16.msra.mxu1 %v1128_v45 }
 0x14d   :  { %1017 = vmatprep.subr.bf16.mxu1 %v1329_v0 }
 0x150   :  { %1018 = vmatpush3.bf16.msra.mxu1 %v1129_v54 }
 0x151   :  { %1019 = vmatprep.subr.bf16.mxu1 %v1329_v0 }
 0x154   :  { %1020 = vmatpush3.bf16.msra.mxu1 %v1130_v55 }
 0x155   :  { %1021 = vmatprep.subr.bf16.mxu1 %v1329_v0 }
 0x158   :  { %1022 = vmatpush3.bf16.msra.mxu1 %v1131_v56 }
 0x159   :  { %1023 = vmatprep.subr.bf16.mxu1 %v1329_v0 }
 0x15c   :  { %1024 = vmatpush3.bf16.msra.mxu1 %v1132_v57 }
 0x15d   :  { %1025 = vmatprep.subr.bf16.mxu1 %v1329_v0 }
 0x160   :  { %1026 = vmatpush3.bf16.msra.mxu1 %v1133_v58 }
 0x161   :  { %1027 = vmatprep.subr.bf16.mxu1 %v1329_v0 }
 0x164   :  { %1028 = vmatpush3.bf16.msra.mxu1 %v1134_v59 }
 0x165   :  { %1053 = vmatprep.subr.bf16.mxu1 %v1329_v0 }
 0x21a   :  { %v302_v47 = vpop.f32.mrb[0].mxu1 }
 0x21b   :  { %v303_v48 = vadd.f32 %v872_v46, %v302_v47  ;;  %v1011_v49 = vpop.f32.mrb[1].mxu1 }
 0x21c   :  { %v305_v50 = vpop.f32.mrb[2].mxu1 }
 0x21d   :  { %v308_v51 = vmax.f32 %v303_v48, 0.0  ;;  %v1012_v52 = vpop.f32.mrb[3].mxu1 }
 0x21f   :  { %v309_v53 = vpack.c.bf16 %v308_v51, %v308_v51 }
 0x221   :  { %451 = vmatmul.mubr.bf16.vlgmr.msra.gmra.mrb[4].mxu0 %v309_v53 }
 0x222   :  { %1049 = vmatprep.mubr.msk.bf16.mxu0 %vm1330_vm0, %v1329_v0  ;;  %1034 = vmatpush3.bf16.msra.mxu0 %v1135_v60 }
 0x223   :  { %1035 = vmatprep.subr.bf16.mxu0 %v1329_v0 }
 0x226   :  { %1036 = vmatpush3.bf16.msra.mxu0 %v1136_v61 }
 0x227   :  { %1037 = vmatprep.subr.bf16.mxu0 %v1329_v0 }
 0x22a   :  { %1038 = vmatpush3.bf16.msra.mxu0 %v1137_v62 }
 0x22b   :  { %1039 = vmatprep.subr.bf16.mxu0 %v1329_v0 }
 0x22e   :  { %1040 = vmatpush3.bf16.msra.mxu0 %v1138_v63 }
 0x22f   :  { %1041 = vmatprep.subr.bf16.mxu0 %v1329_v0 }
 0x232   :  { %1042 = vmatpush3.bf16.msra.mxu0 %v1139_v1 }
 0x233   :  { %1043 = vmatprep.subr.bf16.mxu0 %v1329_v0 }
 0x236   :  { %1044 = vmatpush3.bf16.msra.mxu0 %v1140_v2 }
 0x237   :  { %1045 = vmatprep.subr.bf16.mxu0 %v1329_v0 }
 0x23a   :  { %1046 = vmatpush3.bf16.msra.mxu0 %v1141_v23 }
 0x23b   :  { %1047 = vmatprep.subr.bf16.mxu0 %v1329_v0 }
 0x23e   :  { %1048 = vmatpush3.bf16.msra.mxu0 %v1142_v24 }
 0x2f4   :  { %v452_v10 = vpop.f32.mrb[4].mxu0 }
 0x2f5   :  { %v453_v11 = vadd.f32 %v452_v10, %v331_v8  ;;  %v454_v12 = vpop.f32.mrb[5].mxu0 }
 0x2f6   :  { %v455_v13 = vadd.f32 %v454_v12, %v335_v9  ;;  %v456_v14 = vpop.f32.mrb[6].mxu0 }
 0x2f7   :  { %816 = vst [vmem:[#allocation11] sm:$0xff] %v453_v11  ;;  %v457_v15 = vpop.f32.mrb[7].mxu0 }
 0x2f8   :  { %v460_v16 = vmul.f32 0.5, %v455_v13  ;;  %817 = vst [vmem:[#allocation13] sm:$0xff] %v455_v13 }
 0x2fa   :  { %v461_v17 = vmul.f32 1.442695, %v460_v16 }
 0x2fc   :  { %1151 = vpow2.f32 %v461_v17 }
 0x306   :  { %v1152_v19 = vpop.eup %1151 }
 0x307   :  { %v463_v20 = vmul.f32 %v1152_v19, %v459_v18 }
 0x309   :  { %v464_v21 = vadd.f32 %v463_v20, %v453_v11 }
 0x30b   :  { %v465_v22 = vpack.c.bf16 %v464_v21, %v464_v21 }
 0x30d   :  { %1030 = vmatmul.mubr.bf16.vlgmr.msra.gmra.mrb[4].mxu1 %v465_v22 }
 0x30e   :  { %1069 = vmatprep.mubr.msk.bf16.mxu1 %vm1330_vm0, %v1329_v0  ;;  %1054 = vmatpush3.bf16.msra.mxu1 %v1143_v25 }
 0x30f   :  { %1055 = vmatprep.subr.bf16.mxu1 %v1329_v0 }
 0x312   :  { %1056 = vmatpush3.bf16.msra.mxu1 %v1144_v26 }
 0x313   :  { %1057 = vmatprep.subr.bf16.mxu1 %v1329_v0 }
 0x316   :  { %1058 = vmatpush3.bf16.msra.mxu1 %v1145_v27 }
 0x317   :  { %1059 = vmatprep.subr.bf16.mxu1 %v1329_v0 }
 0x31a   :  { %1060 = vmatpush3.bf16.msra.mxu1 %v1146_v28 }
 0x31b   :  { %1061 = vmatprep.subr.bf16.mxu1 %v1329_v0 }
 0x31e   :  { %1062 = vmatpush3.bf16.msra.mxu1 %v1147_v29 }
 0x31f   :  { %1063 = vmatprep.subr.bf16.mxu1 %v1329_v0 }
 0x322   :  { %1064 = vmatpush3.bf16.msra.mxu1 %v1148_v30 }
 0x323   :  { %1065 = vmatprep.subr.bf16.mxu1 %v1329_v0 }
 0x326   :  { %1066 = vmatpush3.bf16.msra.mxu1 %v1149_v39 }
 0x327   :  { %1067 = vmatprep.subr.bf16.mxu1 %v1329_v0 }
 0x32a   :  { %1068 = vmatpush3.bf16.msra.mxu1 %v1150_v40 }
 0x3e0   :  { %v573_v32 = vpop.f32.mrb[4].mxu1 }
 0x3e1   :  { %v574_v33 = vadd.f32 %v898_v31, %v573_v32  ;;  %v1031_v34 = vpop.f32.mrb[5].mxu1 }
 0x3e2   :  { %v576_v35 = vpop.f32.mrb[6].mxu1 }
 0x3e3   :  { %v579_v36 = vmax.f32 %v574_v33, 0.0  ;;  %v1032_v37 = vpop.f32.mrb[7].mxu1 }
 0x3e5   :  { %v580_v38 = vpack.c.bf16 %v579_v36, %v579_v36 }
 0x3e7   :  { %1050 = vmatmul.mubr.bf16.vlgmr.msra.gmra.mrb[8].mxu0 %v580_v38 }
 0x4ba   :  { %v688_v42 = vpop.f32.mrb[8].mxu0 }
 0x4bb   :  { %v689_v43 = vadd.f32 %v908_v41, %v688_v42  ;;  %v1051_v44 = vpop.f32.mrb[9].mxu0 }
 0x4bc   :  { %v691_v45 = vpop.f32.mrb[10].mxu0 }
 0x4bd   :  { %v694_v46 = vmax.f32 %v689_v43, 0.0  ;;  %v1052_v47 = vpop.f32.mrb[11].mxu0 }
 0x4bf   :  { %v695_v48 = vpack.c.bf16 %v694_v46, %v694_v46 }
 0x4c1   :  { %1070 = vmatmul.mubr.bf16.vlgmr.msra.gmra.mrb[8].mxu1 %v695_v48 }
 0x4c2   :  { %1256 = shalt.err (!%p1253_p8)
}
 0x4c3   :  { %s1257_s21 = scalar_lea.hbm %s1539_s7, 128 }
 0x4c4   :  { %p1258_p9 = scmp.ne.s32.totalorder %s1539_s7, %s1257_s21  ;;  %p1261_p10 = scmp.lt.u32.totalorder %s1257_s21, %s1539_s7 }
 0x4c6   :  { %p1263_p11 = pnand %p1261_p10, %p1258_p9 }
 0x4c8   :  { %1266 = shalt.err (!%p1263_p11)
}
 0x4c9   :  { %837 = dma.vmem_to_hbm [thread:$0]  %s835_s17, 128, %s1539_s7, [#allocation12]  }
 0x4ca   :  { %s1333_s27 = smov [#allocation13]  }
 0x4cb   :  { %s844_s2 = sshll.u32 %s1333_s27, 4  ;;  %s845_s2 = int_to_ptr.vmem [resolvable:$true] %s844_s2 }
 0x4cc   :  { %s1267_s28 = scalar_lea.vmem %s845_s2, 128  ;;  %p1272_p13 = scmp.lt.s32.totalorder %s845_s2, %s845_s2 }
 0x4cd   :  { %p1268_p12 = scmp.ne.s32.totalorder %s845_s2, %s1267_s28  ;;  %p1273_p0 = scmp.lt.s32.totalorder %s1267_s28, %s1267_s28 }
 0x4cf   :  { %p1274_p1 = por %p1273_p0, %p1272_p13 }
 0x4d1   :  { %p1275_p2 = pnand %p1274_p1, %p1268_p12 }
 0x4d3   :  { %1278 = shalt.err (!%p1275_p2)
}
 0x4d4   :  { %s1279_s4 = scalar_lea.hbm %s1540_s8, 128 }
 0x4d5   :  { %p1280_p3 = scmp.ne.s32.totalorder %s1540_s8, %s1279_s4  ;;  %p1283_p4 = scmp.lt.u32.totalorder %s1279_s4, %s1540_s8 }
 0x4d7   :  { %p1285_p5 = pnand %p1283_p4, %p1280_p3 }
 0x4d9   :  { %1288 = shalt.err (!%p1285_p5)
}
 0x4da   :  { %847 = dma.vmem_to_hbm [thread:$0]  %s845_s2, 128, %s1540_s8, [#allocation12]   ;;  %v918_v0 = vld [vmem:[%s1535_s3 + $0x4] ss:$0 sm:$0xff] }
 0x4db   :  { %s1334_s16 = smov [#allocation10]  }
 0x4dc   :  { %s824_s0 = sshll.u32 %s1334_s16, 4  ;;  %s825_s0 = int_to_ptr.vmem [resolvable:$true] %s824_s0 }
 0x4dd   :  { %s1289_s8 = scalar_lea.vmem %s825_s0, 128  ;;  %p1294_p7 = scmp.lt.s32.totalorder %s825_s0, %s825_s0 }
 0x4de   :  { %p1290_p6 = scmp.ne.s32.totalorder %s825_s0, %s1289_s8  ;;  %p1295_p8 = scmp.lt.s32.totalorder %s1289_s8, %s1289_s8 }
 0x4e0   :  { %p1296_p9 = por %p1295_p8, %p1294_p7 }
 0x4e2   :  { %p1297_p10 = pnand %p1296_p9, %p1290_p6 }
 0x594   :  { %v803_v49 = vpop.f32.mrb[8].mxu1 }
 0x595   :  { %v804_v50 = vadd.f32 %v918_v0, %v803_v49  ;;  %v1071_v51 = vpop.f32.mrb[9].mxu1 }
 0x596   :  { %v806_v52 = vpop.f32.mrb[10].mxu1 }
 0x597   :  { %v927_v53 = vmul.f32 -1.442695, %v804_v50  ;;  %v1072_v54 = vpop.f32.mrb[11].mxu1 }
 0x599   :  { %1153 = vpow2.f32 %v927_v53 }
 0x5a3   :  { %v1154_v55 = vpop.eup %1153 }
 0x5a4   :  { %v812_v56 = vadd.f32 1.0, %v1154_v55 }
 0x5a6   :  { %1155 = vrcp.f32 %v812_v56 }
 0x5b0   :  { %v1156_v57 = vpop.eup %1155 }
 0x5b1   :  { %815 = vst [vmem:[#allocation10] sm:$0xff] %v1156_v57 }
 0x5b2   :  { %1300 = shalt.err (!%p1297_p10)
}
 0x5b3   :  { %s1301_s17 = scalar_lea.hbm %s1538_s6, 128 }
 0x5b4   :  { %p1302_p11 = scmp.ne.s32.totalorder %s1538_s6, %s1301_s17  ;;  %p1305_p12 = scmp.lt.u32.totalorder %s1301_s17, %s1538_s6 }
 0x5b6   :  { %p1307_p13 = pnand %p1305_p12, %p1302_p11 }
 0x5b8   :  { %1310 = shalt.err (!%p1307_p13)
}
 0x5b9   :  { %827 = dma.vmem_to_hbm [thread:$0]  %s825_s0, 128, %s1538_s6, [#allocation4]  }
 0x5ba   :  { %1317 = dma.done.wait [#allocation4], 128  }
 0x5bb   :  { %1318 = vsyncadd [#allocation4], 4294967168 }
 0x5bc   :  { %1319 = dma.done.wait [#allocation12], 256  }
 0x5bd   :  { %1320 = vsyncadd [#allocation12], 4294967040 }
 0x5be   :  { %857 = vsyncpa [#allocation3], 1 }
 0x5bf   :  { %858 = vsyncpa [#allocation6], 1 }
 0x5c0   :  { %859 = vsyncpa [#allocation9], 1 }
 0x5c1   :  { %860 = vsyncpa [#allocation4], 1 }
 0x5c2   :  { %861 = vsyncpa [#allocation12], 1 }

</bundles_post_ra>
